<compile_context>
chip_gen: v6e
topology: v6e:2x2x1
jax: 0.10.0
libtpu: 0.0.40
codegen_flags: <defaults>
</compile_context>

<pallas_src>
import functools

import jax
import jax.numpy as jnp
from jax import lax
from jax.experimental import pallas as pl
from jax.experimental.pallas import tpu as pltpu


_LANES = 128  # TPU vreg lane width; the batch lives on this axis in-kernel


def task_model_kernel(x_ref,
                      w_in_ref, b_in_ref,
                      w_m1_ref, b_m1_ref,
                      w_m2_ref, b_m2_ref,
                      w_out_ref, b_out_ref,
                      o_ref):
    """One batch tile.

    x_ref is batch-major (bt, D_in).  The first layer contracts over the last
    dim of both operands (y^T = W @ x^T), so every activation is lane-dense
    (features, batch) from layer 1 onward; weights stay PyTorch-style
    (out_features, in_features) and biases are (out_features, 1) columns.
    Accumulation is always f32 (preferred_element_type).
    """
    # input_layer + ReLU                                        -> (H0, bt)
    h = lax.dot_general(
        w_in_ref[...], x_ref[...],
        dimension_numbers=(((1,), (1,)), ((), ())),
        preferred_element_type=jnp.float32) + b_in_ref[...]
    h = jnp.maximum(h, 0.0)

    # meta_model: Linear -> ReLU -> Linear -> ReLU               -> (H2, bt)
    h = jnp.dot(w_m1_ref[...], h.astype(w_m1_ref.dtype),
                preferred_element_type=jnp.float32) + b_m1_ref[...]
    h = jnp.maximum(h, 0.0)
    h = jnp.dot(w_m2_ref[...], h.astype(w_m2_ref.dtype),
                preferred_element_type=jnp.float32) + b_m2_ref[...]
    h = jnp.maximum(h, 0.0)

    # output_layer (no activation)                               -> (D_out, bt)
    o_ref[...] = (jnp.dot(w_out_ref[...], h.astype(w_out_ref.dtype),
                          preferred_element_type=jnp.float32)
                  + b_out_ref[...]).astype(o_ref.dtype)


def _replicated_spec(shape):
    # Full-array block with a constant block index: stays resident in VMEM
    # across the (parallel) batch grid, no per-step re-DMA.
    return pl.BlockSpec(shape, lambda i: (0,) * len(shape))


@functools.partial(jax.jit, static_argnames=("batch_tile", "use_bf16"))
def task_model_forward(x, params, *, batch_tile=2048, use_bf16=False):
    """x: (B, input_dim) -> (B, output_dim) float32.

    Params in PyTorch (out_features, in_features) layout, biases (out, 1).
    `use_bf16=True` casts x and the weights (not biases) to bfloat16 to halve
    HBM traffic on v6e/v7x; accumulation stays f32.
    """
    (w_in, b_in, w_m1, b_m1, w_m2, b_m2, w_out, b_out) = params
    B, D_in = x.shape
    D_out = w_out.shape[0]

    compute_dtype = jnp.bfloat16 if use_bf16 else jnp.float32
    x = x.astype(compute_dtype)
    w_in, w_m1, w_m2, w_out = (w.astype(compute_dtype)
                               for w in (w_in, w_m1, w_m2, w_out))
    b_in, b_m1, b_m2, b_out = (b.astype(jnp.float32)
                               for b in (b_in, b_m1, b_m2, b_out))

    # ---- batch tiling ------------------------------------------------------
    # One grid step whenever the padded batch fits batch_tile.  Only split the
    # grid (for v7x's two TensorCores) when each step still carries >= 4 lane
    # tiles (>= 512 rows); on single-TC v5e/v6e extra steps are pure per-step
    # overhead, so they are never created for small batches.
    num_lane_tiles = pl.cdiv(B, _LANES)
    max_tiles_per_step = max(batch_tile // _LANES, 1)
    grid_steps = pl.cdiv(num_lane_tiles, max_tiles_per_step)
    if grid_steps == 1 and num_lane_tiles >= 8:
        grid_steps = 2
    tiles_per_step = pl.cdiv(num_lane_tiles, grid_steps)
    bt = tiles_per_step * _LANES
    B_pad = grid_steps * bt

    # Batch-major zero-pad only (no wrapper transpose); fused under this jit.
    x_p = jnp.pad(x, ((0, B_pad - B), (0, 0)))

    oT = pl.pallas_call(
        task_model_kernel,
        out_shape=jax.ShapeDtypeStruct((D_out, B_pad), jnp.float32),
        grid=(grid_steps,),
        in_specs=[
            pl.BlockSpec((bt, D_in), lambda i: (i, 0)),
            _replicated_spec(w_in.shape), _replicated_spec(b_in.shape),
            _replicated_spec(w_m1.shape), _replicated_spec(b_m1.shape),
            _replicated_spec(w_m2.shape), _replicated_spec(b_m2.shape),
            _replicated_spec(w_out.shape), _replicated_spec(b_out.shape),
        ],
        out_specs=pl.BlockSpec((D_out, bt), lambda i: (0, i)),
        compiler_params=pltpu.CompilerParams(
            dimension_semantics=("parallel",)),
    )(x_p, w_in, b_in, w_m1, b_m1, w_m2, b_m2, w_out, b_out)

    # Slice off the batch padding; tiny (D_out x B) transpose fuses in this jit.
    return oT[:, :B].T


def init_params(key, input_dim, h0, h1, h2, output_dim):
    """Deterministic synthetic weights, PyTorch nn.Linear layout.

    W is (out_features, in_features); bias is an (out_features, 1) column so it
    broadcasts over the lane (batch) axis inside the kernel.
    """
    ks = jax.random.split(key, 8)

    def linear(kw, kb, fan_in, fan_out):
        scale = 1.0 / jnp.sqrt(fan_in)
        w = jax.random.uniform(kw, (fan_out, fan_in), jnp.float32, -scale, scale)
        b = jax.random.uniform(kb, (fan_out, 1), jnp.float32, -scale, scale)
        return w, b

    w_in, b_in = linear(ks[0], ks[1], input_dim, h0)      # input_layer
    w_m1, b_m1 = linear(ks[2], ks[3], h0, h1)             # meta_model.hidden[0]
    w_m2, b_m2 = linear(ks[4], ks[5], h1, h2)             # meta_model.hidden[-2]
    w_out, b_out = linear(ks[6], ks[7], h2, output_dim)   # output_layer
    return (w_in, b_in, w_m1, b_m1, w_m2, b_m2, w_out, b_out)


def reference_forward(x, params):
    (w_in, b_in, w_m1, b_m1, w_m2, b_m2, w_out, b_out) = params
    h = jnp.maximum(x @ w_in.T + b_in.T, 0.0)
    h = jnp.maximum(h @ w_m1.T + b_m1.T, 0.0)
    h = jnp.maximum(h @ w_m2.T + b_m2.T, 0.0)
    return h @ w_out.T + b_out.T


if __name__ == "__main__":
    # Small state-vector DQN head.
    input_dim = 16
    h0, h1, h2 = 32, 64, 32        # meta_model hidden sizes
    output_dim = 4                 # number of actions

    key = jax.random.PRNGKey(0)
    kx, kp = jax.random.split(key)
    params = init_params(kp, input_dim, h0, h1, h2, output_dim)

    # --- f32 path, B=300: single grid step of 3 lane tiles (no fragmentation).
    batch = 300
    x = jax.random.normal(kx, (batch, input_dim), jnp.float32)
    out = jax.block_until_ready(task_model_forward(x, params))
    ref = reference_forward(x, params)
    assert out.shape == (batch, output_dim)
    assert jnp.allclose(out, ref, atol=1e-4, rtol=1e-4), (
        float(jnp.max(jnp.abs(out - ref))))

    # --- f32 path, B=1200: exercises the 2-step "parallel" grid (>=512 rows
    # per step, so both v7x TensorCores get real work).
    batch2 = 1200
    x2 = jax.random.normal(jax.random.fold_in(kx, 1), (batch2, input_dim),
                           jnp.float32)
    out2 = jax.block_until_ready(task_model_forward(x2, params))
    ref2 = reference_forward(x2, params)
    assert out2.shape == (batch2, output_dim)
    assert jnp.allclose(out2, ref2, atol=1e-4, rtol=1e-4), (
        float(jnp.max(jnp.abs(out2 - ref2))))

    # --- bf16 input/weight path (v6e/v7x HBM-traffic optimization); compared
    # against a reference that applies the same bf16 rounding to x / weights.
    out_bf16 = jax.block_until_ready(
        task_model_forward(x, params, use_bf16=True))
    (w_in, b_in, w_m1, b_m1, w_m2, b_m2, w_out, b_out) = params
    bf = lambda a: a.astype(jnp.bfloat16).astype(jnp.float32)
    params_bf = (bf(w_in), b_in, bf(w_m1), b_m1, bf(w_m2), b_m2, bf(w_out), b_out)
    ref_bf16 = reference_forward(bf(x), params_bf)
    assert jnp.allclose(out_bf16, ref_bf16, atol=5e-2, rtol=5e-2), (
        float(jnp.max(jnp.abs(out_bf16 - ref_bf16))))

    print("KERNEL_OK")
</pallas_src>

<mosaic_0001>
module attributes {stable_mosaic.version = 11 : i64} {
  func.func @task_model_kernel(%arg0: i32, %arg1: memref<384x16xf32, #tpu.memory_space<vmem>>, %arg2: memref<32x16xf32, #tpu.memory_space<vmem>>, %arg3: memref<32x1xf32, #tpu.memory_space<vmem>>, %arg4: memref<64x32xf32, #tpu.memory_space<vmem>>, %arg5: memref<64x1xf32, #tpu.memory_space<vmem>>, %arg6: memref<32x64xf32, #tpu.memory_space<vmem>>, %arg7: memref<32x1xf32, #tpu.memory_space<vmem>>, %arg8: memref<4x32xf32, #tpu.memory_space<vmem>>, %arg9: memref<4x1xf32, #tpu.memory_space<vmem>>, %arg10: memref<4x384xf32, #tpu.memory_space<vmem>>) attributes {dimension_semantics = [#tpu.dimension_semantics<parallel>], iteration_bounds = array<i64: 1>, scalar_prefetch = 0 : i64, scratch_operands = 0 : i64, tpu.core_type = #tpu.core_type<tc>, window_params = [{transform_indices = @transform_0, window_bounds = array<i64: 384, 16>}, {pipeline_mode = #tpu.pipeline_mode<synchronous>, transform_indices = @transform_1, window_bounds = array<i64: 32, 16>}, {pipeline_mode = #tpu.pipeline_mode<synchronous>, transform_indices = @transform_2, window_bounds = array<i64: 32, 1>}, {pipeline_mode = #tpu.pipeline_mode<synchronous>, transform_indices = @transform_3, window_bounds = array<i64: 64, 32>}, {pipeline_mode = #tpu.pipeline_mode<synchronous>, transform_indices = @transform_4, window_bounds = array<i64: 64, 1>}, {pipeline_mode = #tpu.pipeline_mode<synchronous>, transform_indices = @transform_5, window_bounds = array<i64: 32, 64>}, {pipeline_mode = #tpu.pipeline_mode<synchronous>, transform_indices = @transform_6, window_bounds = array<i64: 32, 1>}, {pipeline_mode = #tpu.pipeline_mode<synchronous>, transform_indices = @transform_7, window_bounds = array<i64: 4, 32>}, {pipeline_mode = #tpu.pipeline_mode<synchronous>, transform_indices = @transform_8, window_bounds = array<i64: 4, 1>}, {transform_indices = @transform_9, window_bounds = array<i64: 4, 384>}]} {
    %c0 = arith.constant 0 : index
    %c0_0 = arith.constant 0 : index
    %0 = vector.load %arg2[%c0, %c0_0] : memref<32x16xf32, #tpu.memory_space<vmem>>, vector<32x16xf32>
    %c0_1 = arith.constant 0 : index
    %c0_2 = arith.constant 0 : index
    %1 = vector.load %arg1[%c0_1, %c0_2] : memref<384x16xf32, #tpu.memory_space<vmem>>, vector<384x16xf32>
    %cst = arith.constant dense<0.000000e+00> : vector<32x384xf32>
    %2 = tpu.matmul %0, %1, %cst {dimension_numbers = #tpu.dot_dimension_numbers<[1], [1], [0], [0], [0, 0, 1, 0], [], []>} : vector<32x16xf32>, vector<384x16xf32>, vector<32x384xf32> -> vector<32x384xf32>
    %c0_3 = arith.constant 0 : index
    %c0_4 = arith.constant 0 : index
    %3 = vector.load %arg3[%c0_3, %c0_4] : memref<32x1xf32, #tpu.memory_space<vmem>>, vector<32x1xf32>
    %4 = vector.broadcast %3 : vector<32x1xf32> to vector<32x384xf32>
    %5 = arith.addf %2, %4 : vector<32x384xf32>
    %cst_5 = arith.constant 0.000000e+00 : f32
    %6 = vector.broadcast %cst_5 : f32 to vector<32x384xf32>
    %7 = arith.maximumf %5, %6 : vector<32x384xf32>
    %c0_6 = arith.constant 0 : index
    %c0_7 = arith.constant 0 : index
    %8 = vector.load %arg4[%c0_6, %c0_7] : memref<64x32xf32, #tpu.memory_space<vmem>>, vector<64x32xf32>
    %cst_8 = arith.constant dense<0.000000e+00> : vector<64x384xf32>
    %9 = tpu.matmul %8, %7, %cst_8 {dimension_numbers = #tpu.dot_dimension_numbers<[1], [0], [0], [1], [0, 0, 1, 1], [], []>} : vector<64x32xf32>, vector<32x384xf32>, vector<64x384xf32> -> vector<64x384xf32>
    %c0_9 = arith.constant 0 : index
    %c0_10 = arith.constant 0 : index
    %10 = vector.load %arg5[%c0_9, %c0_10] : memref<64x1xf32, #tpu.memory_space<vmem>>, vector<64x1xf32>
    %11 = vector.broadcast %10 : vector<64x1xf32> to vector<64x384xf32>
    %12 = arith.addf %9, %11 : vector<64x384xf32>
    %cst_11 = arith.constant 0.000000e+00 : f32
    %13 = vector.broadcast %cst_11 : f32 to vector<64x384xf32>
    %14 = arith.maximumf %12, %13 : vector<64x384xf32>
    %c0_12 = arith.constant 0 : index
    %c0_13 = arith.constant 0 : index
    %15 = vector.load %arg6[%c0_12, %c0_13] : memref<32x64xf32, #tpu.memory_space<vmem>>, vector<32x64xf32>
    %cst_14 = arith.constant dense<0.000000e+00> : vector<32x384xf32>
    %16 = tpu.matmul %15, %14, %cst_14 {dimension_numbers = #tpu.dot_dimension_numbers<[1], [0], [0], [1], [0, 0, 1, 1], [], []>} : vector<32x64xf32>, vector<64x384xf32>, vector<32x384xf32> -> vector<32x384xf32>
    %c0_15 = arith.constant 0 : index
    %c0_16 = arith.constant 0 : index
    %17 = vector.load %arg7[%c0_15, %c0_16] : memref<32x1xf32, #tpu.memory_space<vmem>>, vector<32x1xf32>
    %18 = vector.broadcast %17 : vector<32x1xf32> to vector<32x384xf32>
    %19 = arith.addf %16, %18 : vector<32x384xf32>
    %cst_17 = arith.constant 0.000000e+00 : f32
    %20 = vector.broadcast %cst_17 : f32 to vector<32x384xf32>
    %21 = arith.maximumf %19, %20 : vector<32x384xf32>
    %c0_18 = arith.constant 0 : index
    %c0_19 = arith.constant 0 : index
    %22 = vector.load %arg8[%c0_18, %c0_19] : memref<4x32xf32, #tpu.memory_space<vmem>>, vector<4x32xf32>
    %cst_20 = arith.constant dense<0.000000e+00> : vector<4x384xf32>
    %23 = tpu.matmul %22, %21, %cst_20 {dimension_numbers = #tpu.dot_dimension_numbers<[1], [0], [0], [1], [0, 0, 1, 1], [], []>} : vector<4x32xf32>, vector<32x384xf32>, vector<4x384xf32> -> vector<4x384xf32>
    %c0_21 = arith.constant 0 : index
    %c0_22 = arith.constant 0 : index
    %24 = vector.load %arg9[%c0_21, %c0_22] : memref<4x1xf32, #tpu.memory_space<vmem>>, vector<4x1xf32>
    %25 = vector.broadcast %24 : vector<4x1xf32> to vector<4x384xf32>
    %26 = arith.addf %23, %25 : vector<4x384xf32>
    %c0_23 = arith.constant 0 : index
    %c0_24 = arith.constant 0 : index
    %27 = vector.load %arg10[%c0_23, %c0_24] : memref<4x384xf32, #tpu.memory_space<vmem>>, vector<4x384xf32>
    tpu.vector_store %arg10[%c0_23, %c0_24], %26 {strides = array<i32>} : memref<4x384xf32, #tpu.memory_space<vmem>>, vector<4x384xf32>,
    return
  }
  func.func @transform_0(%arg0: i32) -> (i32, i32) {
    %c0_i32 = arith.constant 0 : i32
    %c0_i32_0 = arith.constant 0 : i32
    return %arg0, %c0_i32 : i32, i32
  }
  func.func @transform_1(%arg0: i32) -> (i32, i32) {
    %c0_i32 = arith.constant 0 : i32
    %c0_i32_0 = arith.constant 0 : i32
    %c0_i32_1 = arith.constant 0 : i32
    return %c0_i32, %c0_i32_0 : i32, i32
  }
  func.func @transform_2(%arg0: i32) -> (i32, i32) {
    %c0_i32 = arith.constant 0 : i32
    %c0_i32_0 = arith.constant 0 : i32
    %c0_i32_1 = arith.constant 0 : i32
    return %c0_i32, %c0_i32_0 : i32, i32
  }
  func.func @transform_3(%arg0: i32) -> (i32, i32) {
    %c0_i32 = arith.constant 0 : i32
    %c0_i32_0 = arith.constant 0 : i32
    %c0_i32_1 = arith.constant 0 : i32
    return %c0_i32, %c0_i32_0 : i32, i32
  }
  func.func @transform_4(%arg0: i32) -> (i32, i32) {
    %c0_i32 = arith.constant 0 : i32
    %c0_i32_0 = arith.constant 0 : i32
    %c0_i32_1 = arith.constant 0 : i32
    return %c0_i32, %c0_i32_0 : i32, i32
  }
  func.func @transform_5(%arg0: i32) -> (i32, i32) {
    %c0_i32 = arith.constant 0 : i32
    %c0_i32_0 = arith.constant 0 : i32
    %c0_i32_1 = arith.constant 0 : i32
    return %c0_i32, %c0_i32_0 : i32, i32
  }
  func.func @transform_6(%arg0: i32) -> (i32, i32) {
    %c0_i32 = arith.constant 0 : i32
    %c0_i32_0 = arith.constant 0 : i32
    %c0_i32_1 = arith.constant 0 : i32
    return %c0_i32, %c0_i32_0 : i32, i32
  }
  func.func @transform_7(%arg0: i32) -> (i32, i32) {
    %c0_i32 = arith.constant 0 : i32
    %c0_i32_0 = arith.constant 0 : i32
    %c0_i32_1 = arith.constant 0 : i32
    return %c0_i32, %c0_i32_0 : i32, i32
  }
  func.func @transform_8(%arg0: i32) -> (i32, i32) {
    %c0_i32 = arith.constant 0 : i32
    %c0_i32_0 = arith.constant 0 : i32
    %c0_i32_1 = arith.constant 0 : i32
    return %c0_i32, %c0_i32_0 : i32, i32
  }
  func.func @transform_9(%arg0: i32) -> (i32, i32) {
    %c0_i32 = arith.constant 0 : i32
    %c0_i32_0 = arith.constant 0 : i32
    return %c0_i32, %arg0 : i32, i32
  }
}

</mosaic_0001>

<bundles_post_ra>
// kernel: task_model_forward.1
= control target key start
LH: loop header
LB: loop body
LE: loop exit
PB: predicated region body
PF: predicated region fallthrough
CT: control target
= control target key end

     0   :  { %vm108_vm0 = vcmask 130048   ;;  %v1429_v3 = vmov 0   ;;  %vm507_vm1 = vcmask 261120   ;;  %vm802_vm2 = vcmask 523264   ;;  %s1930_s0 = inlined_call_operand.vmem [shape: f32[384,16], index: 0, kind: input, shape index: {}]   ;;  %s1931_s1 = inlined_call_operand.vmem [shape: f32[32,16], index: 1, kind: input, shape index: {}]   ;;  %s1932_s2 = inlined_call_operand.vmem [shape: f32[32,1], index: 2, kind: input, shape index: {}]   ;;  %s1933_s4 = inlined_call_operand.vmem [shape: f32[64,1], index: 4, kind: input, shape index: {}]   ;;  %s1934_s6 = inlined_call_operand.vmem [shape: f32[32,1], index: 6, kind: input, shape index: {}]   ;;  %s1935_s8 = inlined_call_operand.vmem [shape: f32[4,1], index: 8, kind: input, shape index: {}]   ;;  %s1936_s3 = inlined_call_operand.vmem [shape: f32[64,32], index: 3, kind: input, shape index: {}]   ;;  %s1937_s5 = inlined_call_operand.vmem [shape: f32[32,64], index: 5, kind: input, shape index: {}]   ;;  %s1938_s7 = inlined_call_operand.vmem [shape: f32[4,32], index: 7, kind: input, shape index: {}]   ;;  %s1939_s9 = inlined_call_operand.vmem [shape: f32[4,384], index: 9, kind: output, shape index: {}]  }
   0x1   :  { %v67_v0 = vld [vmem:[%s1930_s0 + $0xf8] sm:$0xff]  ;;  %1427 = vset.pattern.permute.xlu0 %v1429_v3  ;;  %1428 = vset.pattern.permute.xlu1 %v1429_v3  ;;  %v66_v4 = vld [vmem:[%s1930_s0 + $0xf0] sm:$0xff]  ;;  %v65_v7 = vld [vmem:[%s1930_s0 + $0xe8] sm:$0xff]  ;;  %vm1431_vm3 = vmmov 0  }
   0x2   :  { %v83_v1 = vld [vmem:[%s1930_s0 + $0x178] sm:$0xff]  ;;  %1244 = vmatprep.subr.msk.mxu0 %vm108_vm0, %v67_v0  ;;  %v82_v5 = vld [vmem:[%s1930_s0 + $0x170] sm:$0xff]  ;;  %v81_v8 = vld [vmem:[%s1930_s0 + $0x168] sm:$0xff] }
   0x3   :  { %v51_v2 = vld [vmem:[%s1930_s0 + $0x78] sm:$0xff]  ;;  %1333 = vmatprep.subr.msk.mxu1 %vm108_vm0, %v83_v1  ;;  %v50_v6 = vld [vmem:[%s1930_s0 + $0x70] sm:$0xff]  ;;  %v49_v9 = vld [vmem:[%s1930_s0 + $0x68] sm:$0xff] }
   0x4   :  { %1245 = vmatpush3.xpose.msk.msra.mxu0 %vm108_vm0, %v51_v2  ;;  %1334 = vmatpush3.xpose.msk.msra.mxu1 %vm108_vm0, %v83_v1  ;;  %v64_v10 = vld [vmem:[%s1930_s0 + $0xe0] sm:$0xff]  ;;  %v63_v13 = vld [vmem:[%s1930_s0 + $0xd8] sm:$0xff]  ;;  %v62_v16 = vld [vmem:[%s1930_s0 + $0xd0] sm:$0xff] }
   0x5   :  { %1246 = vmatprep.subr.msk.mxu0 %vm108_vm0, %v66_v4  ;;  %1335 = vmatprep.subr.msk.mxu1 %vm108_vm0, %v82_v5  ;;  %v80_v11 = vld [vmem:[%s1930_s0 + $0x160] sm:$0xff]  ;;  %v79_v14 = vld [vmem:[%s1930_s0 + $0x158] sm:$0xff]  ;;  %v78_v17 = vld [vmem:[%s1930_s0 + $0x150] sm:$0xff] }
   0x6   :  { %v48_v12 = vld [vmem:[%s1930_s0 + $0x60] sm:$0xff]  ;;  %v47_v15 = vld [vmem:[%s1930_s0 + $0x58] sm:$0xff]  ;;  %v85_v20 = vld [vmem:[%s1932_s2 + $0x8] sm:$0xff] }
   0x7   :  { %v1554_v18 = vld [vmem:[%s1931_s1] sm:$0xff]  ;;  %v87_v19 = vld [vmem:[%s1932_s2 + $0x18] sm:$0xff]  ;;  %v46_v21 = vld [vmem:[%s1930_s0 + $0x50] sm:$0xff]  ;;  %95 = vperm.xlu1 %1428, %v85_v20  }
   0x8   :  { %1247 = vmatpush3.xpose.msk.msra.mxu0 %vm108_vm0, %v50_v6  ;;  %1336 = vmatpush3.xpose.msk.msra.mxu1 %vm108_vm0, %v82_v5  ;;  %v61_v22 = vld [vmem:[%s1930_s0 + $0xc8] sm:$0xff]  ;;  %v86_v24 = vld [vmem:[%s1932_s2 + $0x10] sm:$0xff]  ;;  %v84_v25 = vld [vmem:[%s1932_s2] sm:$0xff] }
   0x9   :  { %1248 = vmatprep.subr.msk.mxu0 %vm108_vm0, %v65_v7  ;;  %1337 = vmatprep.subr.msk.mxu1 %vm108_vm0, %v81_v8  ;;  %v77_v23 = vld [vmem:[%s1930_s0 + $0x148] sm:$0xff]  ;;  %v60_v27 = vld [vmem:[%s1930_s0 + $0xc0] sm:$0xff]  ;;  %v466_v29 = vld [vmem:[%s1933_s4 + $0x38] sm:$0xff]  ;;  %v1430_v7 = vmov 0.0  }
   0xa   :  { %1276 = vmatprep.mubr.msk.f32.mxu0 %vm108_vm0, %v1554_v18  ;;  %1365 = vmatprep.mubr.msk.f32.mxu1 %vm108_vm0, %v1554_v18  ;;  %v45_v26 = vld [vmem:[%s1930_s0 + $0x48] sm:$0xff]  ;;  %v76_v28 = vld [vmem:[%s1930_s0 + $0x140] sm:$0xff]  ;;  %v465_v30 = vld [vmem:[%s1933_s4 + $0x30] sm:$0xff] }
   0xb   :  { %105 = vperm.xlu0 %1427, %v87_v19   ;;  %90 = vperm.xlu1 %1428, %v84_v25   ;;  %v44_v31 = vld [vmem:[%s1930_s0 + $0x40] sm:$0xff]  ;;  %v59_v32 = vld [vmem:[%s1930_s0 + $0xb8] sm:$0xff]  ;;  %v464_v34 = vld [vmem:[%s1933_s4 + $0x28] sm:$0xff] }
   0xc   :  { %1249 = vmatpush3.xpose.msk.msra.mxu0 %vm108_vm0, %v49_v9  ;;  %1338 = vmatpush3.xpose.msk.msra.mxu1 %vm108_vm0, %v81_v8  ;;  %v75_v33 = vld [vmem:[%s1930_s0 + $0x138] sm:$0xff]  ;;  %v463_v35 = vld [vmem:[%s1933_s4 + $0x20] sm:$0xff]  ;;  %v58_v37 = vld [vmem:[%s1930_s0 + $0xb0] sm:$0xff] }
   0xd   :  { %1250 = vmatprep.subr.msk.mxu0 %vm108_vm0, %v64_v10  ;;  %1339 = vmatprep.subr.msk.mxu1 %vm108_vm0, %v80_v11  ;;  %v43_v36 = vld [vmem:[%s1930_s0 + $0x38] sm:$0xff]  ;;  %v74_v38 = vld [vmem:[%s1930_s0 + $0x130] sm:$0xff]  ;;  %v57_v42 = vld [vmem:[%s1930_s0 + $0xa8] sm:$0xff] }
   0xe   :  { %v462_v39 = vld [vmem:[%s1933_s4 + $0x18] sm:$0xff]  ;;  %v461_v40 = vld [vmem:[%s1933_s4 + $0x10] sm:$0xff]  ;;  %v73_v43 = vld [vmem:[%s1930_s0 + $0x128] sm:$0xff] }
   0xf   :  { %100 = vperm.xlu0 %1427, %v86_v24   ;;  %499 = vperm.xlu1 %1428, %v465_v30   ;;  %v42_v41 = vld [vmem:[%s1930_s0 + $0x30] sm:$0xff]  ;;  %v460_v44 = vld [vmem:[%s1933_s4 + $0x8] sm:$0xff]  ;;  %v459_v45 = vld [vmem:[%s1933_s4] sm:$0xff] }
  0x10   :  { %1251 = vmatpush3.xpose.msk.msra.mxu0 %vm108_vm0, %v48_v12  ;;  %1340 = vmatpush3.xpose.msk.msra.mxu1 %vm108_vm0, %v80_v11  ;;  %v41_v46 = vld [vmem:[%s1930_s0 + $0x28] sm:$0xff]  ;;  %v56_v47 = vld [vmem:[%s1930_s0 + $0xa0] sm:$0xff]  ;;  %v781_v49 = vld [vmem:[%s1934_s6 + $0x18] sm:$0xff] }
  0x11   :  { %1252 = vmatprep.subr.msk.mxu0 %vm108_vm0, %v63_v13  ;;  %1341 = vmatprep.subr.msk.mxu1 %vm108_vm0, %v79_v14  ;;  %v72_v48 = vld [vmem:[%s1930_s0 + $0x120] sm:$0xff]  ;;  %v780_v50 = vld [vmem:[%s1934_s6 + $0x10] sm:$0xff]  ;;  %v55_v52 = vld [vmem:[%s1930_s0 + $0x98] sm:$0xff] }
  0x12   :  { %v40_v51 = vld [vmem:[%s1930_s0 + $0x20] sm:$0xff]  ;;  %v71_v53 = vld [vmem:[%s1930_s0 + $0x118] sm:$0xff]  ;;  %v779_v54 = vld [vmem:[%s1934_s6 + $0x8] sm:$0xff] }
  0x13   :  { %504 = vperm.xlu0 %1427, %v466_v29   ;;  %489 = vperm.xlu1 %1428, %v463_v35   ;;  %v778_v55 = vld [vmem:[%s1934_s6] sm:$0xff]  ;;  %v39_v56 = vld [vmem:[%s1930_s0 + $0x18] sm:$0xff]  ;;  %v54_v57 = vld [vmem:[%s1930_s0 + $0x90] sm:$0xff] }
  0x14   :  { %1253 = vmatpush3.xpose.msk.msra.mxu0 %vm108_vm0, %v47_v15  ;;  %1342 = vmatpush3.xpose.msk.msra.mxu1 %vm108_vm0, %v79_v14  ;;  %v70_v58 = vld [vmem:[%s1930_s0 + $0x110] sm:$0xff]  ;;  %v1002_v59 = vld [vmem:[%s1935_s8] sm:$0xf]  ;;  %v53_v61 = vld [vmem:[%s1930_s0 + $0x88] sm:$0xff] }
  0x15   :  { %1254 = vmatprep.subr.msk.mxu0 %vm108_vm0, %v62_v16  ;;  %1343 = vmatprep.subr.msk.mxu1 %vm108_vm0, %v78_v17  ;;  %v38_v60 = vld [vmem:[%s1930_s0 + $0x10] sm:$0xff]  ;;  %v69_v62 = vld [vmem:[%s1930_s0 + $0x108] sm:$0xff]  ;;  %v52_v0 = vld [vmem:[%s1930_s0 + $0x80] sm:$0xff] }
  0x16   :  { %v37_v63 = vld [vmem:[%s1930_s0 + $0x8] sm:$0xff]  ;;  %v68_v1 = vld [vmem:[%s1930_s0 + $0x100] sm:$0xff]  ;;  %v34_v4 = vld [vmem:[%s1931_s1 + $0x10] sm:$0xff] }
  0x17   :  { %494 = vperm.xlu0 %1427, %v464_v34   ;;  %479 = vperm.xlu1 %1428, %v461_v40   ;;  %v36_v2 = vld [vmem:[%s1930_s0] sm:$0xff]  ;;  %v33_v3 = vld [vmem:[%s1931_s1 + $0x8] sm:$0xff]  ;;  %v35_v5 = vld [vmem:[%s1931_s1 + $0x18] sm:$0xff] }
  0x18   :  { %1255 = vmatpush3.xpose.msk.msra.mxu0 %vm108_vm0, %v46_v21  ;;  %1344 = vmatpush3.xpose.msk.msra.mxu1 %vm108_vm0, %v78_v17  ;;  %v1773_v6 = vld [vmem:[%s1936_s3] sm:$0xff] }
  0x19   :  { %1256 = vmatprep.subr.msk.mxu0 %vm108_vm0, %v61_v22  ;;  %1345 = vmatprep.subr.msk.mxu1 %vm108_vm0, %v77_v23 }
  0x1b   :  { %484 = vperm.xlu0 %1427, %v462_v39   ;;  %469 = vperm.xlu1 %1428, %v459_v45   ;;  %v455_v45 = vld [vmem:[%s1936_s3 + $0x20] sm:$0xff] }
  0x1c   :  { %1257 = vmatpush3.xpose.msk.msra.mxu0 %vm108_vm0, %v45_v26  ;;  %1346 = vmatpush3.xpose.msk.msra.mxu1 %vm108_vm0, %v77_v23 }
  0x1d   :  { %1258 = vmatprep.subr.msk.mxu0 %vm108_vm0, %v60_v27  ;;  %1347 = vmatprep.subr.msk.mxu1 %vm108_vm0, %v76_v28 }
  0x1f   :  { %474 = vperm.xlu0 %1427, %v460_v44   ;;  %794 = vperm.xlu1 %1428, %v780_v50   ;;  %v456_v50 = vld [vmem:[%s1936_s3 + $0x28] sm:$0xff] }
  0x20   :  { %1259 = vmatpush3.xpose.msk.msra.mxu0 %vm108_vm0, %v44_v31  ;;  %1348 = vmatpush3.xpose.msk.msra.mxu1 %vm108_vm0, %v76_v28 }
  0x21   :  { %1260 = vmatprep.subr.msk.mxu0 %vm108_vm0, %v59_v32  ;;  %1349 = vmatprep.subr.msk.mxu1 %vm108_vm0, %v75_v33 }
  0x23   :  { %799 = vperm.xlu0 %1427, %v781_v49   ;;  %784 = vperm.xlu1 %1428, %v778_v55   ;;  %v1826_v55 = vld [vmem:[%s1937_s5] sm:$0xff] }
  0x24   :  { %1261 = vmatpush3.xpose.msk.msra.mxu0 %vm108_vm0, %v43_v36  ;;  %1350 = vmatpush3.xpose.msk.msra.mxu1 %vm108_vm0, %v75_v33  ;;  %v452_v33 = vld [vmem:[%s1936_s3 + $0x8] sm:$0xff]  ;;  %v453_v36 = vld [vmem:[%s1936_s3 + $0x10] sm:$0xff] }
  0x25   :  { %1262 = vmatprep.subr.msk.mxu0 %vm108_vm0, %v58_v37  ;;  %1351 = vmatprep.subr.msk.mxu1 %vm108_vm0, %v74_v38 }
  0x27   :  { %789 = vperm.xlu0 %1427, %v779_v54   ;;  %v458_v54 = vld [vmem:[%s1936_s3 + $0x38] sm:$0xff] }
  0x28   :  { %1263 = vmatpush3.xpose.msk.msra.mxu0 %vm108_vm0, %v42_v41  ;;  %1352 = vmatpush3.xpose.msk.msra.mxu1 %vm108_vm0, %v74_v38 }
  0x29   :  { %1264 = vmatprep.subr.msk.mxu0 %vm108_vm0, %v57_v42  ;;  %1353 = vmatprep.subr.msk.mxu1 %vm108_vm0, %v73_v43  ;;  %v454_v42 = vld [vmem:[%s1936_s3 + $0x18] sm:$0xff] }
  0x2b   :  { %1005 = vperm.xlu0 %1427, %v1002_v59  }
  0x2c   :  { %1265 = vmatpush3.xpose.msk.msra.mxu0 %vm108_vm0, %v41_v46  ;;  %1354 = vmatpush3.xpose.msk.msra.mxu1 %vm108_vm0, %v73_v43 }
  0x2d   :  { %1266 = vmatprep.subr.msk.mxu0 %vm108_vm0, %v56_v47  ;;  %1355 = vmatprep.subr.msk.mxu1 %vm108_vm0, %v72_v48 }
  0x30   :  { %1267 = vmatpush3.xpose.msk.msra.mxu0 %vm108_vm0, %v40_v51  ;;  %1356 = vmatpush3.xpose.msk.msra.mxu1 %vm108_vm0, %v72_v48 }
  0x31   :  { %1268 = vmatprep.subr.msk.mxu0 %vm108_vm0, %v55_v52  ;;  %1357 = vmatprep.subr.msk.mxu1 %vm108_vm0, %v71_v53  ;;  %v457_v52 = vld [vmem:[%s1936_s3 + $0x30] sm:$0xff] }
  0x34   :  { %1269 = vmatpush3.xpose.msk.msra.mxu0 %vm108_vm0, %v39_v56  ;;  %1358 = vmatpush3.xpose.msk.msra.mxu1 %vm108_vm0, %v71_v53 }
  0x35   :  { %1270 = vmatprep.subr.msk.mxu0 %vm108_vm0, %v54_v57  ;;  %1359 = vmatprep.subr.msk.mxu1 %vm108_vm0, %v70_v58 }
  0x38   :  { %1271 = vmatpush3.xpose.msk.msra.mxu0 %vm108_vm0, %v38_v60  ;;  %1360 = vmatpush3.xpose.msk.msra.mxu1 %vm108_vm0, %v70_v58 }
  0x39   :  { %1272 = vmatprep.subr.msk.mxu0 %vm108_vm0, %v53_v61  ;;  %1361 = vmatprep.subr.msk.mxu1 %vm108_vm0, %v69_v62 }
  0x3c   :  { %1273 = vmatpush3.xpose.msk.msra.mxu0 %vm108_vm0, %v37_v63  ;;  %1362 = vmatpush3.xpose.msk.msra.mxu1 %vm108_vm0, %v69_v62 }
  0x3d   :  { %1274 = vmatprep.subr.msk.mxu0 %vm108_vm0, %v52_v0  ;;  %1363 = vmatprep.subr.msk.mxu1 %vm108_vm0, %v68_v1 }
  0x40   :  { %1275 = vmatpush3.xpose.msk.msra.mxu0 %vm108_vm0, %v36_v2  ;;  %1364 = vmatpush3.xpose.msk.msra.mxu1 %vm108_vm0, %v68_v1 }
  0x43   :  { %1277 = vmatmul.mubr.msk.f32.vlgmr.msra.gmra.mxu0 %vm108_vm0, %v1554_v18  ;;  %1366 = vmatmul.mubr.msk.f32.vlgmr.msra.gmra.mxu1 %vm108_vm0, %v33_v3 }
  0x44   :  { %1278 = vmatprep.mubr.msk.f32.mxu0 %vm108_vm0, %v33_v3  ;;  %1368 = vmatprep.mubr.msk.f32.mxu1 %vm108_vm0, %v34_v4 }
  0x47   :  { %1279 = vmatmul.mubr.msk.f32.gmra.mxu0 %vm108_vm0, %v33_v3  ;;  %1369 = vmatmul.mubr.msk.f32.gmra.mxu1 %vm108_vm0, %v35_v5 }
  0x48   :  { %1280 = vmatprep.mubr.msk.f32.mxu0 %vm108_vm0, %v34_v4  ;;  %596 = vmatprep.mubr.f32.mxu1 %v1430_v7 }
  0x4b   :  { %1281 = vmatmul.mubr.msk.f32.gmra.mxu0 %vm108_vm0, %v34_v4 }
  0x4c   :  { %1282 = vmatprep.mubr.msk.f32.mxu0 %vm108_vm0, %v35_v5 }
  0x4f   :  { %1283 = vmatmul.mubr.msk.f32.gmra.mxu0 %vm108_vm0, %v35_v5 }
  0x50   :  { %1379 = vmatprep.mubr.msk.f32.mxu0 %vm507_vm1, %v1773_v6 }
  0x82   :  { %v96_v9 = vpop.permute.xlu1 %95 }
  0x86   :  { %v106_v8 = vpop.permute.xlu0 %105  ;;  %v91_v17 = vpop.permute.xlu1 %90 }
  0x8a   :  { %v101_v16 = vpop.permute.xlu0 %100  ;;  %v1832_v60 = vpop.permute.xlu1 %499 }
  0x8e   :  { %v1830_v58 = vpop.permute.xlu0 %504  ;;  %v1838_v2 = vpop.permute.xlu1 %489 }
  0x92   :  { %v1834_v63 = vpop.permute.xlu0 %494 }
 0x103   :  { %v331_v10 = vpop.f32.mrf.mxu0  ;;  %v1367_v11 = vpop.f32.mrf.mxu1 }
 0x104   :  { %v426_v18 = vadd.f32 %v1367_v11, %v96_v9  ;;  %v332_v46 = vadd.f32 %v331_v10, %v91_v17 }
 0x105   :  { %v333_v12 = vpop.f32.mrf.mxu0  ;;  %v420_v13 = vpop.f32.mrf.mxu1 }
 0x106   :  { %v421_v22 = vadd.f32 %v420_v13, %v91_v17  ;;  %v444_v26 = vmax.f32 %v426_v18, 0.0  ;;  %v334_v43 = vadd.f32 %v333_v12, %v91_v17  ;;  %v439_v53 = vmax.f32 %v332_v46, 0.0  ;;  %v1847_v12 = vpop.permute.xlu0 %484 }
 0x107   :  { %v337_v14 = vpop.f32.mrf.mxu0  ;;  %v1370_v15 = vpop.f32.mrf.mxu1 }
 0x108   :  { %v436_v19 = vadd.f32 %v1370_v15, %v106_v8  ;;  %v441_v29 = vmax.f32 %v421_v22, 0.0  ;;  %v338_v40 = vadd.f32 %v337_v14, %v96_v9  ;;  %v440_v51 = vmax.f32 %v334_v43, 0.0 }
 0x109   :  { %v339_v20 = vpop.f32.mrf.mxu0  ;;  %v430_v21 = vpop.f32.mrf.mxu1 }
 0x10a   :  { %v450_v23 = vmax.f32 %v436_v19, 0.0  ;;  %v431_v24 = vadd.f32 %v430_v21, %v101_v16  ;;  %v340_v38 = vadd.f32 %v339_v20, %v96_v9  ;;  %v442_v49 = vmax.f32 %v338_v40, 0.0  ;;  %v777_v40 = vld [vmem:[%s1937_s5 + $0x18] sm:$0xff] }
 0x10b   :  { %v343_v25 = vpop.f32.mrf.mxu0 }
 0x10c   :  { %v447_v27 = vmax.f32 %v431_v24, 0.0  ;;  %1371 = vmatprep.subr.mxu0 %v450_v23  ;;  %v344_v37 = vadd.f32 %v343_v25, %v101_v16  ;;  %v443_v48 = vmax.f32 %v340_v38, 0.0 }
 0x10d   :  { %v345_v28 = vpop.f32.mrf.mxu0  ;;  %1372 = vmatpush3.msra.mxu0 %v450_v23  ;;  %v1858_v23 = vpop.permute.xlu0 %474 }
 0x10e   :  { %1373 = vmatprep.subr.mxu0 %v447_v27  ;;  %v346_v34 = vadd.f32 %v345_v28, %v101_v16  ;;  %v445_v47 = vmax.f32 %v344_v37, 0.0  ;;  %v1852_v16 = vpop.permute.xlu1 %479  ;;  %v1872_v37 = vld [vmem:[%s1937_s5 + $0x10] sm:$0xff] }
 0x10f   :  { %v349_v30 = vpop.f32.mrf.mxu0  ;;  %1374 = vmatpush3.msra.mxu0 %v447_v27 }
 0x110   :  { %1375 = vmatprep.subr.mxu0 %v444_v26  ;;  %v350_v31 = vadd.f32 %v349_v30, %v106_v8  ;;  %v446_v44 = vmax.f32 %v346_v34, 0.0 }
 0x111   :  { %v351_v32 = vpop.f32.mrf.mxu0  ;;  %1376 = vmatpush3.msra.mxu0 %v444_v26 }
 0x112   :  { %v352_v35 = vadd.f32 %v351_v32, %v106_v8  ;;  %1377 = vmatprep.subr.mxu0 %v441_v29  ;;  %v448_v41 = vmax.f32 %v350_v31, 0.0  ;;  %v1861_v27 = vpop.permute.xlu1 %469 }
 0x113   :  { %1378 = vmatpush3.msra.mxu0 %v441_v29 }
 0x114   :  { %v449_v39 = vmax.f32 %v352_v35, 0.0  ;;  %1380 = vmatmul.mubr.msk.f32.vlgmr.msra.gmra.mxu0 %vm507_vm1, %v452_v33 }
 0x115   :  { %1382 = vmatprep.mubr.msk.f32.mxu0 %vm507_vm1, %v453_v36 }
 0x116   :  { %556 = vmatprep.subr.mxu1 %v449_v39 }
 0x117   :  { %557 = vmatpush1.msra.mxu1 %v448_v41 }
 0x118   :  { %558 = vmatprep.subr.mxu1 %v446_v44  ;;  %1383 = vmatmul.mubr.msk.f32.gmra.mxu0 %vm507_vm1, %v454_v42 }
 0x119   :  { %559 = vmatpush1.msra.mxu1 %v445_v47  ;;  %1385 = vmatprep.mubr.msk.f32.mxu0 %vm507_vm1, %v455_v45 }
 0x11a   :  { %560 = vmatprep.subr.mxu1 %v443_v48 }
 0x11b   :  { %561 = vmatpush1.msra.mxu1 %v442_v49 }
 0x11c   :  { %562 = vmatprep.subr.mxu1 %v440_v51  ;;  %1386 = vmatmul.mubr.msk.f32.gmra.mxu0 %vm507_vm1, %v456_v50 }
 0x11d   :  { %563 = vmatpush1.msra.mxu1 %v439_v53  ;;  %1388 = vmatprep.mubr.msk.f32.mxu0 %vm507_vm1, %v457_v52 }
 0x11e   :  { %1218 = vmatmul.mubr.msk.f32.vlgmr.msra.gmra.mxu1 %vm507_vm1, %v1773_v6 }
 0x11f   :  { %602 = vmatprep.mubr.f32.mxu1 %v1430_v7 }
 0x120   :  { %1389 = vmatmul.mubr.msk.f32.gmra.mxu0 %vm507_vm1, %v458_v54 }
 0x121   :  { %879 = vmatprep.mubr.f32.mxu0 %v1430_v7 }
 0x122   :  { %1219 = vmatmul.mubr.msk.f32.gmra.mxu1 %vm507_vm1, %v452_v33 }
 0x123   :  { %608 = vmatprep.mubr.f32.mxu1 %v1430_v7 }
 0x126   :  { %1220 = vmatmul.mubr.msk.f32.gmra.mxu1 %vm507_vm1, %v453_v36  ;;  %v1867_v36 = vld [vmem:[%s1937_s5 + $0x8] sm:$0xff] }
 0x127   :  { %614 = vmatprep.mubr.f32.mxu1 %v1430_v7 }
 0x12a   :  { %1221 = vmatmul.mubr.msk.f32.gmra.mxu1 %vm507_vm1, %v454_v42 }
 0x12b   :  { %620 = vmatprep.mubr.f32.mxu1 %v1430_v7 }
 0x12e   :  { %1222 = vmatmul.mubr.msk.f32.gmra.mxu1 %vm507_vm1, %v455_v45 }
 0x12f   :  { %626 = vmatprep.mubr.f32.mxu1 %v1430_v7 }
 0x132   :  { %1223 = vmatmul.mubr.msk.f32.gmra.mxu1 %vm507_vm1, %v456_v50 }
 0x133   :  { %632 = vmatprep.mubr.f32.mxu1 %v1430_v7 }
 0x136   :  { %1224 = vmatmul.mubr.msk.f32.gmra.mxu1 %vm507_vm1, %v457_v52 }
 0x137   :  { %638 = vmatprep.mubr.f32.mxu1 %v1430_v7 }
 0x13a   :  { %1225 = vmatmul.mubr.msk.f32.gmra.mxu1 %vm507_vm1, %v458_v54 }
 0x13b   :  { %1407 = vmatprep.mubr.msk.f32.mxu1 %vm802_vm2, %v1826_v55 }
 0x1d4   :  { %v1381_v56 = vpop.f32.mrf.mxu0 }
 0x1d5   :  { %v717_v25 = vadd.f32 %v1381_v56, %v1858_v23 }
 0x1d6   :  { %v711_v57 = vpop.f32.mrf.mxu0 }
 0x1d7   :  { %v712_v29 = vadd.f32 %v711_v57, %v1861_v27  ;;  %v755_v32 = vmax.f32 %v717_v25, 0.0 }
 0x1d8   :  { %v1384_v59 = vpop.f32.mrf.mxu0 }
 0x1d9   :  { %v727_v18 = vadd.f32 %v1384_v59, %v1847_v12  ;;  %v752_v34 = vmax.f32 %v712_v29, 0.0  ;;  %v1001_v29 = vld [vmem:[%s1938_s7] sm:$0xf] }
 0x1da   :  { %v721_v61 = vpop.f32.mrf.mxu0 }
 0x1db   :  { %v722_v21 = vadd.f32 %v721_v61, %v1852_v16  ;;  %v761_v26 = vmax.f32 %v727_v18, 0.0 }
 0x1dc   :  { %v1387_v62 = vpop.f32.mrf.mxu0 }
 0x1dd   :  { %v737_v9 = vadd.f32 %v1387_v62, %v1834_v63  ;;  %v758_v30 = vmax.f32 %v722_v21, 0.0 }
 0x1de   :  { %v1836_v0 = vpop.f32.mrf.mxu1  ;;  %v731_v1 = vpop.f32.mrf.mxu0 }
 0x1df   :  { %v732_v14 = vadd.f32 %v731_v1, %v1838_v2  ;;  %v767_v19 = vmax.f32 %v737_v9, 0.0 }
 0x1e0   :  { %v1840_v3 = vpop.f32.mrf.mxu1  ;;  %v1390_v4 = vpop.f32.mrf.mxu0 }
 0x1e1   :  { %v747_v5 = vadd.f32 %v1390_v4, %v1830_v58  ;;  %v764_v22 = vmax.f32 %v732_v14, 0.0  ;;  %v601_v9 = vadd.f32 %v1840_v3, %v1861_v27  ;;  %v795_v3 = vpop.permute.xlu1 %794 }
 0x1e2   :  { %v1843_v6 = vpop.f32.mrf.mxu1  ;;  %v741_v8 = vpop.f32.mrf.mxu0 }
 0x1e3   :  { %v773_v10 = vmax.f32 %v747_v5, 0.0  ;;  %v742_v11 = vadd.f32 %v741_v8, %v1832_v60  ;;  %v605_v5 = vadd.f32 %v1843_v6, %v1858_v23 }
 0x1e4   :  { %v1849_v13 = vpop.f32.mrf.mxu1 }
 0x1e5   :  { %v770_v15 = vmax.f32 %v742_v11, 0.0  ;;  %1391 = vmatprep.subr.mxu1 %v773_v10  ;;  %v599_v11 = vadd.f32 %v1836_v0, %v1861_v27 }
 0x1e6   :  { %v1854_v17 = vpop.f32.mrf.mxu1  ;;  %1392 = vmatpush3.msra.mxu1 %v773_v10 }
 0x1e7   :  { %1393 = vmatprep.subr.mxu1 %v770_v15 }
 0x1e8   :  { %v612_v20 = vpop.f32.mrf.mxu1  ;;  %1394 = vmatpush3.msra.mxu1 %v770_v15  ;;  %v751_v15 = vmax.f32 %v601_v9, 0.0 }
 0x1e9   :  { %1395 = vmatprep.subr.mxu1 %v767_v19  ;;  %v613_v61 = vadd.f32 %v612_v20, %v1852_v16 }
 0x1ea   :  { %v616_v24 = vpop.f32.mrf.mxu1  ;;  %1396 = vmatpush3.msra.mxu1 %v767_v19 }
 0x1eb   :  { %1397 = vmatprep.subr.mxu1 %v764_v22  ;;  %v757_v10 = vmax.f32 %v613_v61, 0.0 }
 0x1ec   :  { %v618_v28 = vpop.f32.mrf.mxu1  ;;  %1398 = vmatpush3.msra.mxu1 %v764_v22 }
 0x1ed   :  { %1399 = vmatprep.subr.mxu1 %v761_v26  ;;  %v619_v57 = vadd.f32 %v618_v28, %v1847_v12 }
 0x1ee   :  { %v622_v31 = vpop.f32.mrf.mxu1  ;;  %1400 = vmatpush3.msra.mxu1 %v761_v26 }
 0x1ef   :  { %1401 = vmatprep.subr.mxu1 %v758_v30  ;;  %v623_v54 = vadd.f32 %v622_v31, %v1838_v2  ;;  %v760_v4 = vmax.f32 %v619_v57, 0.0 }
 0x1f0   :  { %v624_v33 = vpop.f32.mrf.mxu1  ;;  %1402 = vmatpush3.msra.mxu1 %v758_v30 }
 0x1f1   :  { %1403 = vmatprep.subr.mxu1 %v755_v32  ;;  %v625_v52 = vadd.f32 %v624_v33, %v1838_v2  ;;  %v762_v1 = vmax.f32 %v623_v54, 0.0  ;;  %v607_v2 = vadd.f32 %v1849_v13, %v1858_v23  ;;  %v753_v13 = vmax.f32 %v605_v5, 0.0 }
 0x1f2   :  { %v628_v35 = vpop.f32.mrf.mxu1  ;;  %1404 = vmatpush3.msra.mxu1 %v755_v32 }
 0x1f3   :  { %1405 = vmatprep.subr.mxu1 %v752_v34  ;;  %v629_v50 = vadd.f32 %v628_v35, %v1834_v63  ;;  %v763_v62 = vmax.f32 %v625_v52, 0.0  ;;  %v754_v14 = vmax.f32 %v607_v2, 0.0 }
 0x1f4   :  { %v630_v38 = vpop.f32.mrf.mxu1  ;;  %1406 = vmatpush3.msra.mxu1 %v752_v34 }
 0x1f5   :  { %1408 = vmatmul.mubr.msk.f32.vlgmr.msra.gmra.mxu1 %vm802_vm2, %v1867_v36  ;;  %1413 = vmatprep.subr.mxu1 %v1430_v7  ;;  %v631_v48 = vadd.f32 %v630_v38, %v1834_v63  ;;  %v611_v63 = vadd.f32 %v1854_v17, %v1852_v16  ;;  %v750_v16 = vmax.f32 %v599_v11, 0.0 }
 0x1f6   :  { %v634_v39 = vpop.f32.mrf.mxu1  ;;  %1410 = vmatprep.mubr.msk.f32.mxu1 %vm802_vm2, %v1872_v37 }
 0x1f7   :  { %v635_v47 = vadd.f32 %v634_v39, %v1832_v60  ;;  %v766_v59 = vmax.f32 %v631_v48, 0.0 }
 0x1f8   :  { %v636_v41 = vpop.f32.mrf.mxu1 }
 0x1f9   :  { %1411 = vmatmul.mubr.msk.f32.gmra.mxu1 %vm802_vm2, %v777_v40  ;;  %v637_v45 = vadd.f32 %v636_v41, %v1832_v60  ;;  %v768_v56 = vmax.f32 %v635_v47, 0.0  ;;  %v765_v60 = vmax.f32 %v629_v50, 0.0 }
 0x1fa   :  { %v640_v42 = vpop.f32.mrf.mxu1  ;;  %1421 = vmatprep.mubr.msk.f32.mxu1 %vm1431_vm3, %v1430_v7 }
 0x1fb   :  { %v641_v43 = vadd.f32 %v640_v42, %v1830_v58  ;;  %v769_v53 = vmax.f32 %v637_v45, 0.0 }
 0x1fc   :  { %v642_v44 = vpop.f32.mrf.mxu1 }
 0x1fd   :  { %v643_v46 = vadd.f32 %v642_v44, %v1830_v58  ;;  %v771_v51 = vmax.f32 %v641_v43, 0.0  ;;  %v617_v58 = vadd.f32 %v616_v24, %v1847_v12  ;;  %v756_v12 = vmax.f32 %v611_v63, 0.0  ;;  %v785_v24 = vpop.permute.xlu1 %784 }
 0x1ff   :  { %v772_v49 = vmax.f32 %v643_v46, 0.0  ;;  %v759_v8 = vmax.f32 %v617_v58, 0.0 }
 0x201   :  { %831 = vmatprep.subr.mxu0 %v772_v49 }
 0x202   :  { %832 = vmatpush1.msra.mxu0 %v771_v51 }
 0x203   :  { %833 = vmatprep.subr.mxu0 %v769_v53 }
 0x204   :  { %834 = vmatpush1.msra.mxu0 %v768_v56 }
 0x205   :  { %835 = vmatprep.subr.mxu0 %v766_v59 }
 0x206   :  { %836 = vmatpush1.msra.mxu0 %v765_v60 }
 0x207   :  { %837 = vmatprep.subr.mxu0 %v763_v62 }
 0x208   :  { %838 = vmatpush1.msra.mxu0 %v762_v1 }
 0x209   :  { %839 = vmatprep.subr.mxu0 %v760_v4 }
 0x20a   :  { %840 = vmatpush1.msra.mxu0 %v759_v8 }
 0x20b   :  { %841 = vmatprep.subr.mxu0 %v757_v10 }
 0x20c   :  { %842 = vmatpush1.msra.mxu0 %v756_v12 }
 0x20d   :  { %843 = vmatprep.subr.mxu0 %v754_v14 }
 0x20e   :  { %844 = vmatpush1.msra.mxu0 %v753_v13 }
 0x20f   :  { %845 = vmatprep.subr.mxu0 %v751_v15 }
 0x210   :  { %846 = vmatpush1.msra.mxu0 %v750_v16 }
 0x211   :  { %1234 = vmatmul.mubr.msk.f32.vlgmr.msra.gmra.mxu0 %vm802_vm2, %v1826_v55  ;;  %v800_v55 = vpop.permute.xlu0 %799 }
 0x212   :  { %885 = vmatprep.mubr.f32.mxu0 %v1430_v7 }
 0x215   :  { %1235 = vmatmul.mubr.msk.f32.gmra.mxu0 %vm802_vm2, %v1867_v36  ;;  %v790_v19 = vpop.permute.xlu0 %789 }
 0x216   :  { %891 = vmatprep.mubr.f32.mxu0 %v1430_v7 }
 0x219   :  { %1236 = vmatmul.mubr.msk.f32.gmra.mxu0 %vm802_vm2, %v1872_v37  ;;  %v1006_v53 = vpop.permute.xlu0 %1005 }
 0x21a   :  { %897 = vmatprep.mubr.f32.mxu0 %v1430_v7 }
 0x21d   :  { %1237 = vmatmul.mubr.msk.f32.gmra.mxu0 %vm802_vm2, %v777_v40 }
 0x21e   :  { %1075 = vmatprep.mubr.f32.mxu0 %v1430_v7 }
 0x2b5   :  { %v1409_v0 = vpop.f32.mrf.mxu1 }
 0x2b6   :  { %v976_v21 = vadd.f32 %v1409_v0, %v790_v19 }
 0x2b7   :  { %v970_v6 = vpop.f32.mrf.mxu1 }
 0x2b8   :  { %v971_v25 = vadd.f32 %v970_v6, %v785_v24  ;;  %v994_v27 = vmax.f32 %v976_v21, 0.0 }
 0x2b9   :  { %v1412_v17 = vpop.f32.mrf.mxu1 }
 0x2ba   :  { %v986_v18 = vadd.f32 %v1412_v17, %v800_v55  ;;  %v991_v28 = vmax.f32 %v971_v25, 0.0 }
 0x2bb   :  { %v980_v20 = vpop.f32.mrf.mxu1 }
 0x2bc   :  { %v1000_v22 = vmax.f32 %v986_v18, 0.0  ;;  %v981_v23 = vadd.f32 %v980_v20, %v795_v3 }
 0x2be   :  { %v997_v26 = vmax.f32 %v981_v23, 0.0  ;;  %1414 = vmatpush3.msra.mxu1 %v1000_v22 }
 0x2bf   :  { %1415 = vmatprep.subr.mxu1 %v1430_v7 }
 0x2c0   :  { %1416 = vmatpush3.msra.mxu1 %v997_v26 }
 0x2c1   :  { %1417 = vmatprep.subr.mxu1 %v1430_v7 }
 0x2c2   :  { %1418 = vmatpush3.msra.mxu1 %v994_v27 }
 0x2c3   :  { %1419 = vmatprep.subr.mxu1 %v1430_v7 }
 0x2c4   :  { %1420 = vmatpush3.msra.mxu1 %v991_v28 }
 0x2c5   :  { %1422 = vmatmul.mubr.msk.f32.vlgmr.msra.gmra.mxu1 %vm507_vm1, %v1001_v29 }
 0x2d1   :  { %v881_v30 = vpop.f32.mrf.mxu0 }
 0x2d2   :  { %v882_v47 = vadd.f32 %v881_v30, %v785_v24 }
 0x2d3   :  { %v883_v31 = vpop.f32.mrf.mxu0 }
 0x2d4   :  { %v884_v7 = vadd.f32 %v883_v31, %v785_v24  ;;  %v989_v52 = vmax.f32 %v882_v47, 0.0 }
 0x2d5   :  { %v887_v32 = vpop.f32.mrf.mxu0 }
 0x2d6   :  { %v888_v44 = vadd.f32 %v887_v32, %v790_v19  ;;  %v990_v51 = vmax.f32 %v884_v7, 0.0 }
 0x2d7   :  { %v889_v33 = vpop.f32.mrf.mxu0 }
 0x2d8   :  { %v890_v42 = vadd.f32 %v889_v33, %v790_v19  ;;  %v992_v50 = vmax.f32 %v888_v44, 0.0 }
 0x2d9   :  { %v893_v34 = vpop.f32.mrf.mxu0 }
 0x2da   :  { %v894_v41 = vadd.f32 %v893_v34, %v795_v3  ;;  %v993_v49 = vmax.f32 %v890_v42, 0.0 }
 0x2db   :  { %v895_v35 = vpop.f32.mrf.mxu0 }
 0x2dc   :  { %v896_v39 = vadd.f32 %v895_v35, %v795_v3  ;;  %v995_v48 = vmax.f32 %v894_v41, 0.0 }
 0x2dd   :  { %v899_v36 = vpop.f32.mrf.mxu0 }
 0x2de   :  { %v900_v37 = vadd.f32 %v899_v36, %v800_v55  ;;  %v996_v46 = vmax.f32 %v896_v39, 0.0 }
 0x2df   :  { %v901_v38 = vpop.f32.mrf.mxu0 }
 0x2e0   :  { %v902_v40 = vadd.f32 %v901_v38, %v800_v55  ;;  %v998_v45 = vmax.f32 %v900_v37, 0.0 }
 0x2e2   :  { %v999_v43 = vmax.f32 %v902_v40, 0.0 }
 0x2e4   :  { %1035 = vmatprep.subr.mxu0 %v999_v43 }
 0x2e5   :  { %1036 = vmatpush1.msra.mxu0 %v998_v45 }
 0x2e6   :  { %1037 = vmatprep.subr.mxu0 %v996_v46 }
 0x2e7   :  { %1038 = vmatpush1.msra.mxu0 %v995_v48 }
 0x2e8   :  { %1039 = vmatprep.subr.mxu0 %v993_v49 }
 0x2e9   :  { %1040 = vmatpush1.msra.mxu0 %v992_v50 }
 0x2ea   :  { %1041 = vmatprep.subr.mxu0 %v990_v51 }
 0x2eb   :  { %1042 = vmatpush1.msra.mxu0 %v989_v52 }
 0x2ec   :  { %1242 = vmatmul.mubr.msk.f32.vlgmr.msra.gmra.mxu0 %vm507_vm1, %v1001_v29 }
 0x385   :  { %v1148_v54 = vpop.f32.mrf.mxu1 }
 0x386   :  { %v1149_v56 = vadd.f32 %v1148_v54, %v1006_v53 }
 0x387   :  { %v1423_v57 = vpop.f32.mrf.mxu1 }
 0x388   :  { %1157 = vst [vmem:[%s1939_s9 + $0x8] sm:$0xf] %v1149_v56 }
 0x3ac   :  { %v1077_v59 = vpop.f32.mrf.mxu0 }
 0x3ad   :  { %v1078_v60 = vadd.f32 %v1077_v59, %v1006_v53 }
 0x3ae   :  { %v1079_v58 = vpop.f32.mrf.mxu0 }
 0x3af   :  { %v1080_v61 = vadd.f32 %v1079_v58, %v1006_v53 }
 0x3b1   :  { %v1154_v62 = vcombine.low %v1078_v60, %v1080_v61 }
 0x3b3   :  { %1156 = vst [vmem:[%s1939_s9] sm:$0xff] %v1154_v62 }

</bundles_post_ra>
